<compile_context>
chip_gen: v5e
topology: v5e:2x2
jax: 0.10.0
libtpu: 0.0.40
codegen_flags: <defaults>
</compile_context>

<pallas_src>
import functools

import jax
import jax.numpy as jnp
from jax import lax
from jax.experimental import pallas as pl
from jax.experimental.pallas import tpu as pltpu


def _tcn_fused_kernel(x_ref, w_ref, shift_ref, o_ref, act_ref, slab_ref, *,
                      n_layers, kernel_size, dilation, pad, act_off, seq_len,
                      batch_block, c_in, c_out, channels, kc_pad):
    """All layers of the TCN stack for one batch block; activation stays in VMEM.

    x_ref:     (B, Cin, L)              NCL input block
    w_ref:     (n_layers, C, kc_pad)    packed taps, BN scale folded in:
                                        w[l][co, k*C+ci] = scale_l[co] * W_l[co, ci, k]
    shift_ref: (n_layers, C, 1) f32     beta + scale*(conv_bias - mean)
    o_ref:     (B, Cout, L)             output block (lane-dense: last dim = L)
    act_ref:   (C, B*(act_off+L)) f32   per-batch-segment left-padded activation
    slab_ref:  (kc_pad, B*L)            shifted slab staged as the MXU RHS
    """
    K, L, B, C = kernel_size, seq_len, batch_block, channels
    seg = act_off + L                              # lanes per batch element in act_ref

    # Zero the scratch: establishes the causal zero-pad lanes and keeps the spare
    # channel rows / spare contraction rows at exactly 0 (cheap: a few dozen vst).
    act_ref[...] = jnp.zeros(act_ref.shape, act_ref.dtype)
    if kc_pad > K * C:
        slab_ref[pl.ds(K * C, kc_pad - K * C), :] = jnp.zeros(
            (kc_pad - K * C, B * L), slab_ref.dtype)

    # Stage this batch block's input at the lane-aligned live offset.
    for b in range(B):
        act_ref[pl.ds(0, c_in), pl.ds(b * seg + act_off, L)] = (
            x_ref[b].astype(act_ref.dtype))

    # TODO(synk): for deep stacks (n_layers > ~4) switch this static unroll to a
    # lax.fori_loop indexing w_ref/shift_ref dynamically to bound code size.
    for layer in range(n_layers):
        # Shifted slab: row k*C + ci, col b*L + l == left-padded act[b, ci, l + k*d].
        for k in range(K):
            for b in range(B):
                slab_ref[pl.ds(k * C, C), pl.ds(b * L, L)] = act_ref[
                    pl.ds(0, C),
                    pl.ds(b * seg + act_off - pad + k * dilation, L),
                ].astype(slab_ref.dtype)

        # One MXU contraction per layer; BN scale already folded into the weights.
        acc = jnp.dot(w_ref[layer], slab_ref[...],
                      preferred_element_type=jnp.float32)        # (C, B*L) f32
        y = jnp.maximum(acc + shift_ref[layer], 0.0)             # bias+BN shift; ReLU

        if layer < n_layers - 1:
            for b in range(B):                                   # aligned write-back
                act_ref[pl.ds(0, C), pl.ds(b * seg + act_off, L)] = (
                    y[:, b * L:(b + 1) * L])
        else:
            for b in range(B):                                   # lane-dense store
                o_ref[b] = y[:c_out, b * L:(b + 1) * L].astype(o_ref.dtype)


def tcn_layer_forward(x_ncl, params, *, dilation, eps=1e-5,
                      compute_dtype=jnp.bfloat16, batch_block=None):
    """TCNLayer forward.  x_ncl: (N, Cin, L) like PyTorch NCL; returns (N, Cout, L).

    params[l]["w"] uses PyTorch Conv1d layout (Cout, Cin, K).
    compute_dtype: dtype of the MXU matmul inputs (bf16 default; f32 supported);
    accumulation and the BN-shift/ReLU tail are always f32.
    """
    N, c_in, L = x_ncl.shape
    n_layers = len(params)
    K = params[0]["w"].shape[2]
    c_out = params[-1]["w"].shape[0]
    C = max([c_in] + [p["w"].shape[0] for p in params])   # common channel width
    pad = (K - 1) * dilation
    act_off = 0 if pad == 0 else ((pad + 127) // 128) * 128   # lane-aligned live offset
    kc = K * C
    kc_pad = ((kc + 127) // 128) * 128                        # lane-dense contraction

    # Batch elements per grid step: widen the matmul lane dim to B*L (>=256 ideal on
    # v6e/v7x).  On v7x prefer N // B >= 2 so ("parallel",) can use both TensorCores;
    # for genuinely tiny N just take the whole batch in one step.
    if batch_block is None:
        batch_block = max(1, -(-256 // L))
    B = max(1, min(batch_block, N))
    while N % B:
        B -= 1

    packed_w, shifts = [], []
    for p in params:
        w = p["w"].astype(jnp.float32)                     # (cout_l, cin_l, K)
        cout_l, cin_l, _ = w.shape
        scale = p["gamma"] / jnp.sqrt(p["var"] + eps)      # BN scale (eval)
        shift = p["beta"] + scale * (p["b"] - p["mean"])   # conv bias folded into shift
        wk = jnp.transpose(w * scale[:, None, None], (2, 1, 0))   # scale folded; (K,ci,co)
        wk = jnp.pad(wk, ((0, 0), (0, C - cin_l), (0, C - cout_l)))
        wk = jnp.transpose(wk, (2, 0, 1)).reshape(C, kc)   # packed[co, k*C + ci]
        packed_w.append(jnp.pad(wk, ((0, 0), (0, kc_pad - kc))))
        shifts.append(jnp.pad(shift, (0, C - cout_l)).reshape(C, 1))

    w_all = jnp.stack(packed_w, axis=0).astype(compute_dtype)   # (n_layers, C, kc_pad)
    shift_all = jnp.stack(shifts, axis=0).astype(jnp.float32)   # (n_layers, C, 1)

    kernel = functools.partial(
        _tcn_fused_kernel, n_layers=n_layers, kernel_size=K, dilation=dilation,
        pad=pad, act_off=act_off, seq_len=L, batch_block=B, c_in=c_in,
        c_out=c_out, channels=C, kc_pad=kc_pad)

    # TODO(synk): for long sequences (v7x's 64 MiB VMEM), tile L in the grid with a
    # (K-1)*dilation halo and/or keep the inter-layer activation scratch in bf16.
    return pl.pallas_call(
        kernel,
        out_shape=jax.ShapeDtypeStruct((N, c_out, L), x_ncl.dtype),
        grid_spec=pltpu.PrefetchScalarGridSpec(
            num_scalar_prefetch=0,
            grid=(N // B,),
            in_specs=[
                pl.BlockSpec((B, c_in, L),          lambda n: (n, 0, 0)),
                pl.BlockSpec((n_layers, C, kc_pad), lambda n: (0, 0, 0)),
                pl.BlockSpec((n_layers, C, 1),      lambda n: (0, 0, 0)),
            ],
            out_specs=pl.BlockSpec((B, c_out, L), lambda n: (n, 0, 0)),
            scratch_shapes=[
                pltpu.VMEM((C, B * (act_off + L)), jnp.float32),  # padded activation
                pltpu.VMEM((kc_pad, B * L), compute_dtype),       # shifted slab (MXU RHS)
            ],
        ),
        compiler_params=pltpu.CompilerParams(
            dimension_semantics=("parallel",)),   # lets v7x split batch blocks over 2 TCs
    )(x_ncl, w_all, shift_all)


def _reference_forward(x_ncl, params, *, dilation, eps=1e-5):
    """Pure-JAX reference mirroring the PyTorch module (eval mode)."""
    out = x_ncl
    for p in params:
        w = p["w"]                                   # (Cout, Cin, K) == PyTorch layout
        K = w.shape[2]
        pad = (K - 1) * dilation
        y = lax.conv_general_dilated(
            out, w, window_strides=(1,), padding=[(pad, pad)],
            rhs_dilation=(dilation,),
            dimension_numbers=("NCH", "OIH", "NCH"),
            precision=lax.Precision.HIGHEST)
        y = y + p["b"][None, :, None]
        if pad > 0:
            y = y[:, :, :-pad]                                   # TrailingPadding
        scale = p["gamma"] / jnp.sqrt(p["var"] + eps)
        y = (y - p["mean"][None, :, None]) * scale[None, :, None] \
            + p["beta"][None, :, None]                           # BatchNorm1d (eval)
        out = jnp.maximum(y, 0.0)                                # ReLU; Dropout identity
    return out


if __name__ == "__main__":
    # Small deterministic configuration consistent with TCNLayer(__init__).
    N, C_IN, C_OUT, L = 2, 24, 32, 128
    KSIZE, DILATION, N_LAYERS = 3, 2, 2

    key = jax.random.PRNGKey(0)
    keys = jax.random.split(key, 1 + 6 * N_LAYERS)
    x = jax.random.normal(keys[0], (N, C_IN, L), dtype=jnp.float32)  # NCL input

    params = []
    cin = C_IN
    for i in range(N_LAYERS):
        k = keys[1 + 6 * i: 1 + 6 * (i + 1)]
        params.append(dict(
            w=0.1 * jax.random.normal(k[0], (C_OUT, cin, KSIZE), jnp.float32),
            b=0.1 * jax.random.normal(k[1], (C_OUT,), jnp.float32),
            gamma=1.0 + 0.1 * jax.random.normal(k[2], (C_OUT,), jnp.float32),
            beta=0.1 * jax.random.normal(k[3], (C_OUT,), jnp.float32),
            mean=0.1 * jax.random.normal(k[4], (C_OUT,), jnp.float32),
            var=jnp.abs(1.0 + 0.1 * jax.random.normal(k[5], (C_OUT,), jnp.float32)),
        ))
        cin = C_OUT

    ref = jax.block_until_ready(_reference_forward(x, params, dilation=DILATION))

    # Default path: bf16 MXU inputs (native on v5e/v6e/v7x), f32 accumulation + tail.
    out_bf16 = jax.block_until_ready(
        tcn_layer_forward(x, params, dilation=DILATION))
    assert out_bf16.shape == (N, C_OUT, L), out_bf16.shape
    assert jnp.allclose(out_bf16, ref, atol=1e-1, rtol=1e-1), \
        float(jnp.max(jnp.abs(out_bf16 - ref)))

    # f32 MXU-input path (tight check of the eval-mode module semantics).
    out_f32 = jax.block_until_ready(
        tcn_layer_forward(x, params, dilation=DILATION, compute_dtype=jnp.float32))
    assert out_f32.shape == (N, C_OUT, L), out_f32.shape
    assert jnp.allclose(out_f32, ref, atol=1e-3, rtol=1e-3), \
        float(jnp.max(jnp.abs(out_f32 - ref)))

    print("KERNEL_OK")
</pallas_src>

<mosaic_0001>
module attributes {stable_mosaic.version = 11 : i64} {
  func.func @_tcn_fused_kernel(%arg0: i32, %arg1: memref<2x24x128xf32, #tpu.memory_space<vmem>>, %arg2: memref<2x32x128xbf16, #tpu.memory_space<vmem>>, %arg3: memref<2x32x1xf32, #tpu.memory_space<vmem>>, %arg4: memref<2x32x128xf32, #tpu.memory_space<vmem>>, %arg5: memref<32x512xf32, #tpu.memory_space<vmem>>, %arg6: memref<128x256xbf16, #tpu.memory_space<vmem>>) attributes {dimension_semantics = [#tpu.dimension_semantics<parallel>], iteration_bounds = array<i64: 1>, scalar_prefetch = 0 : i64, scratch_operands = 2 : i64, tpu.core_type = #tpu.core_type<tc>, window_params = [{transform_indices = @transform_0, window_bounds = array<i64: 2, 24, 128>}, {pipeline_mode = #tpu.pipeline_mode<synchronous>, transform_indices = @transform_1, window_bounds = array<i64: 2, 32, 128>}, {pipeline_mode = #tpu.pipeline_mode<synchronous>, transform_indices = @transform_2, window_bounds = array<i64: 2, 32, 1>}, {transform_indices = @transform_3, window_bounds = array<i64: 2, 32, 128>}]} {
    %cst = arith.constant 0.000000e+00 : f32
    %0 = vector.broadcast %cst : f32 to vector<32x512xf32>
    %c0 = arith.constant 0 : index
    %c0_0 = arith.constant 0 : index
    %1 = vector.load %arg5[%c0, %c0_0] : memref<32x512xf32, #tpu.memory_space<vmem>>, vector<32x512xf32>
    tpu.vector_store %arg5[%c0, %c0_0], %0 {strides = array<i32>} : memref<32x512xf32, #tpu.memory_space<vmem>>, vector<32x512xf32>,
    %cst_1 = arith.constant 0.000000e+00 : bf16
    %2 = vector.broadcast %cst_1 : bf16 to vector<32x256xbf16>
    %c96 = arith.constant 96 : index
    %c0_2 = arith.constant 0 : index
    %3 = vector.load %arg6[%c96, %c0_2] : memref<128x256xbf16, #tpu.memory_space<vmem>>, vector<32x256xbf16>
    tpu.vector_store %arg6[%c96, %c0_2], %2 {strides = array<i32>} : memref<128x256xbf16, #tpu.memory_space<vmem>>, vector<32x256xbf16>,
    %c0_3 = arith.constant 0 : index
    %c0_4 = arith.constant 0 : index
    %c0_5 = arith.constant 0 : index
    %4 = vector.load %arg1[%c0_3, %c0_4, %c0_5] : memref<2x24x128xf32, #tpu.memory_space<vmem>>, vector<1x24x128xf32>
    %5 = vector.shape_cast %4 : vector<1x24x128xf32> to vector<24x128xf32>
    %c0_6 = arith.constant 0 : index
    %c128 = arith.constant 128 : index
    %6 = vector.load %arg5[%c0_6, %c128] : memref<32x512xf32, #tpu.memory_space<vmem>>, vector<24x128xf32>
    tpu.vector_store %arg5[%c0_6, %c128], %5 {strides = array<i32>} : memref<32x512xf32, #tpu.memory_space<vmem>>, vector<24x128xf32>,
    %c1 = arith.constant 1 : index
    %c0_7 = arith.constant 0 : index
    %c0_8 = arith.constant 0 : index
    %7 = vector.load %arg1[%c1, %c0_7, %c0_8] : memref<2x24x128xf32, #tpu.memory_space<vmem>>, vector<1x24x128xf32>
    %8 = vector.shape_cast %7 : vector<1x24x128xf32> to vector<24x128xf32>
    %c0_9 = arith.constant 0 : index
    %c384 = arith.constant 384 : index
    %9 = vector.load %arg5[%c0_9, %c384] : memref<32x512xf32, #tpu.memory_space<vmem>>, vector<24x128xf32>
    tpu.vector_store %arg5[%c0_9, %c384], %8 {strides = array<i32>} : memref<32x512xf32, #tpu.memory_space<vmem>>, vector<24x128xf32>,
    %c0_10 = arith.constant 0 : index
    %c124 = arith.constant 124 : index
    %10 = vector.load %arg5[%c0_10, %c124] : memref<32x512xf32, #tpu.memory_space<vmem>>, vector<32x128xf32>
    %11 = arith.truncf %10 : vector<32x128xf32> to vector<32x128xbf16>
    %c0_11 = arith.constant 0 : index
    %c0_12 = arith.constant 0 : index
    %12 = vector.load %arg6[%c0_11, %c0_12] : memref<128x256xbf16, #tpu.memory_space<vmem>>, vector<32x128xbf16>
    tpu.vector_store %arg6[%c0_11, %c0_12], %11 {strides = array<i32>} : memref<128x256xbf16, #tpu.memory_space<vmem>>, vector<32x128xbf16>,
    %c0_13 = arith.constant 0 : index
    %c380 = arith.constant 380 : index
    %13 = vector.load %arg5[%c0_13, %c380] : memref<32x512xf32, #tpu.memory_space<vmem>>, vector<32x128xf32>
    %14 = arith.truncf %13 : vector<32x128xf32> to vector<32x128xbf16>
    %c0_14 = arith.constant 0 : index
    %c128_15 = arith.constant 128 : index
    %15 = vector.load %arg6[%c0_14, %c128_15] : memref<128x256xbf16, #tpu.memory_space<vmem>>, vector<32x128xbf16>
    tpu.vector_store %arg6[%c0_14, %c128_15], %14 {strides = array<i32>} : memref<128x256xbf16, #tpu.memory_space<vmem>>, vector<32x128xbf16>,
    %c0_16 = arith.constant 0 : index
    %c126 = arith.constant 126 : index
    %16 = vector.load %arg5[%c0_16, %c126] : memref<32x512xf32, #tpu.memory_space<vmem>>, vector<32x128xf32>
    %17 = arith.truncf %16 : vector<32x128xf32> to vector<32x128xbf16>
    %c32 = arith.constant 32 : index
    %c0_17 = arith.constant 0 : index
    %18 = vector.load %arg6[%c32, %c0_17] : memref<128x256xbf16, #tpu.memory_space<vmem>>, vector<32x128xbf16>
    tpu.vector_store %arg6[%c32, %c0_17], %17 {strides = array<i32>} : memref<128x256xbf16, #tpu.memory_space<vmem>>, vector<32x128xbf16>,
    %c0_18 = arith.constant 0 : index
    %c382 = arith.constant 382 : index
    %19 = vector.load %arg5[%c0_18, %c382] : memref<32x512xf32, #tpu.memory_space<vmem>>, vector<32x128xf32>
    %20 = arith.truncf %19 : vector<32x128xf32> to vector<32x128xbf16>
    %c32_19 = arith.constant 32 : index
    %c128_20 = arith.constant 128 : index
    %21 = vector.load %arg6[%c32_19, %c128_20] : memref<128x256xbf16, #tpu.memory_space<vmem>>, vector<32x128xbf16>
    tpu.vector_store %arg6[%c32_19, %c128_20], %20 {strides = array<i32>} : memref<128x256xbf16, #tpu.memory_space<vmem>>, vector<32x128xbf16>,
    %c0_21 = arith.constant 0 : index
    %c128_22 = arith.constant 128 : index
    %22 = vector.load %arg5[%c0_21, %c128_22] : memref<32x512xf32, #tpu.memory_space<vmem>>, vector<32x128xf32>
    %23 = arith.truncf %22 : vector<32x128xf32> to vector<32x128xbf16>
    %c64 = arith.constant 64 : index
    %c0_23 = arith.constant 0 : index
    %24 = vector.load %arg6[%c64, %c0_23] : memref<128x256xbf16, #tpu.memory_space<vmem>>, vector<32x128xbf16>
    tpu.vector_store %arg6[%c64, %c0_23], %23 {strides = array<i32>} : memref<128x256xbf16, #tpu.memory_space<vmem>>, vector<32x128xbf16>,
    %c0_24 = arith.constant 0 : index
    %c384_25 = arith.constant 384 : index
    %25 = vector.load %arg5[%c0_24, %c384_25] : memref<32x512xf32, #tpu.memory_space<vmem>>, vector<32x128xf32>
    %26 = arith.truncf %25 : vector<32x128xf32> to vector<32x128xbf16>
    %c64_26 = arith.constant 64 : index
    %c128_27 = arith.constant 128 : index
    %27 = vector.load %arg6[%c64_26, %c128_27] : memref<128x256xbf16, #tpu.memory_space<vmem>>, vector<32x128xbf16>
    tpu.vector_store %arg6[%c64_26, %c128_27], %26 {strides = array<i32>} : memref<128x256xbf16, #tpu.memory_space<vmem>>, vector<32x128xbf16>,
    %c0_28 = arith.constant 0 : index
    %c0_29 = arith.constant 0 : index
    %c0_30 = arith.constant 0 : index
    %28 = vector.load %arg2[%c0_28, %c0_29, %c0_30] : memref<2x32x128xbf16, #tpu.memory_space<vmem>>, vector<1x32x128xbf16>
    %29 = vector.shape_cast %28 : vector<1x32x128xbf16> to vector<32x128xbf16>
    %c0_31 = arith.constant 0 : index
    %c0_32 = arith.constant 0 : index
    %30 = vector.load %arg6[%c0_31, %c0_32] : memref<128x256xbf16, #tpu.memory_space<vmem>>, vector<128x256xbf16>
    %cst_33 = arith.constant dense<0.000000e+00> : vector<32x256xf32>
    %31 = tpu.matmul %29, %30, %cst_33 {dimension_numbers = #tpu.dot_dimension_numbers<[1], [0], [0], [1], [0, 0, 1, 1], [], []>} : vector<32x128xbf16>, vector<128x256xbf16>, vector<32x256xf32> -> vector<32x256xf32>
    %c0_34 = arith.constant 0 : index
    %c0_35 = arith.constant 0 : index
    %c0_36 = arith.constant 0 : index
    %32 = vector.load %arg3[%c0_34, %c0_35, %c0_36] : memref<2x32x1xf32, #tpu.memory_space<vmem>>, vector<1x32x1xf32>
    %33 = vector.shape_cast %32 : vector<1x32x1xf32> to vector<32x1xf32>
    %34 = vector.broadcast %33 : vector<32x1xf32> to vector<32x256xf32>
    %35 = arith.addf %31, %34 : vector<32x256xf32>
    %cst_37 = arith.constant 0.000000e+00 : f32
    %36 = vector.broadcast %cst_37 : f32 to vector<32x256xf32>
    %37 = arith.maximumf %35, %36 : vector<32x256xf32>
    %38 = vector.extract_strided_slice %37 {offsets = [0, 0], sizes = [32, 128], strides = [1, 1]} : vector<32x256xf32> to vector<32x128xf32>
    %c0_38 = arith.constant 0 : index
    %c128_39 = arith.constant 128 : index
    %39 = vector.load %arg5[%c0_38, %c128_39] : memref<32x512xf32, #tpu.memory_space<vmem>>, vector<32x128xf32>
    tpu.vector_store %arg5[%c0_38, %c128_39], %38 {strides = array<i32>} : memref<32x512xf32, #tpu.memory_space<vmem>>, vector<32x128xf32>,
    %40 = vector.extract_strided_slice %37 {offsets = [0, 128], sizes = [32, 128], strides = [1, 1]} : vector<32x256xf32> to vector<32x128xf32>
    %c0_40 = arith.constant 0 : index
    %c384_41 = arith.constant 384 : index
    %41 = vector.load %arg5[%c0_40, %c384_41] : memref<32x512xf32, #tpu.memory_space<vmem>>, vector<32x128xf32>
    tpu.vector_store %arg5[%c0_40, %c384_41], %40 {strides = array<i32>} : memref<32x512xf32, #tpu.memory_space<vmem>>, vector<32x128xf32>,
    %c0_42 = arith.constant 0 : index
    %c124_43 = arith.constant 124 : index
    %42 = vector.load %arg5[%c0_42, %c124_43] : memref<32x512xf32, #tpu.memory_space<vmem>>, vector<32x128xf32>
    %43 = arith.truncf %42 : vector<32x128xf32> to vector<32x128xbf16>
    %c0_44 = arith.constant 0 : index
    %c0_45 = arith.constant 0 : index
    %44 = vector.load %arg6[%c0_44, %c0_45] : memref<128x256xbf16, #tpu.memory_space<vmem>>, vector<32x128xbf16>
    tpu.vector_store %arg6[%c0_44, %c0_45], %43 {strides = array<i32>} : memref<128x256xbf16, #tpu.memory_space<vmem>>, vector<32x128xbf16>,
    %c0_46 = arith.constant 0 : index
    %c380_47 = arith.constant 380 : index
    %45 = vector.load %arg5[%c0_46, %c380_47] : memref<32x512xf32, #tpu.memory_space<vmem>>, vector<32x128xf32>
    %46 = arith.truncf %45 : vector<32x128xf32> to vector<32x128xbf16>
    %c0_48 = arith.constant 0 : index
    %c128_49 = arith.constant 128 : index
    %47 = vector.load %arg6[%c0_48, %c128_49] : memref<128x256xbf16, #tpu.memory_space<vmem>>, vector<32x128xbf16>
    tpu.vector_store %arg6[%c0_48, %c128_49], %46 {strides = array<i32>} : memref<128x256xbf16, #tpu.memory_space<vmem>>, vector<32x128xbf16>,
    %c0_50 = arith.constant 0 : index
    %c126_51 = arith.constant 126 : index
    %48 = vector.load %arg5[%c0_50, %c126_51] : memref<32x512xf32, #tpu.memory_space<vmem>>, vector<32x128xf32>
    %49 = arith.truncf %48 : vector<32x128xf32> to vector<32x128xbf16>
    %c32_52 = arith.constant 32 : index
    %c0_53 = arith.constant 0 : index
    %50 = vector.load %arg6[%c32_52, %c0_53] : memref<128x256xbf16, #tpu.memory_space<vmem>>, vector<32x128xbf16>
    tpu.vector_store %arg6[%c32_52, %c0_53], %49 {strides = array<i32>} : memref<128x256xbf16, #tpu.memory_space<vmem>>, vector<32x128xbf16>,
    %c0_54 = arith.constant 0 : index
    %c382_55 = arith.constant 382 : index
    %51 = vector.load %arg5[%c0_54, %c382_55] : memref<32x512xf32, #tpu.memory_space<vmem>>, vector<32x128xf32>
    %52 = arith.truncf %51 : vector<32x128xf32> to vector<32x128xbf16>
    %c32_56 = arith.constant 32 : index
    %c128_57 = arith.constant 128 : index
    %53 = vector.load %arg6[%c32_56, %c128_57] : memref<128x256xbf16, #tpu.memory_space<vmem>>, vector<32x128xbf16>
    tpu.vector_store %arg6[%c32_56, %c128_57], %52 {strides = array<i32>} : memref<128x256xbf16, #tpu.memory_space<vmem>>, vector<32x128xbf16>,
    %c0_58 = arith.constant 0 : index
    %c128_59 = arith.constant 128 : index
    %54 = vector.load %arg5[%c0_58, %c128_59] : memref<32x512xf32, #tpu.memory_space<vmem>>, vector<32x128xf32>
    %55 = arith.truncf %54 : vector<32x128xf32> to vector<32x128xbf16>
    %c64_60 = arith.constant 64 : index
    %c0_61 = arith.constant 0 : index
    %56 = vector.load %arg6[%c64_60, %c0_61] : memref<128x256xbf16, #tpu.memory_space<vmem>>, vector<32x128xbf16>
    tpu.vector_store %arg6[%c64_60, %c0_61], %55 {strides = array<i32>} : memref<128x256xbf16, #tpu.memory_space<vmem>>, vector<32x128xbf16>,
    %c0_62 = arith.constant 0 : index
    %c384_63 = arith.constant 384 : index
    %57 = vector.load %arg5[%c0_62, %c384_63] : memref<32x512xf32, #tpu.memory_space<vmem>>, vector<32x128xf32>
    %58 = arith.truncf %57 : vector<32x128xf32> to vector<32x128xbf16>
    %c64_64 = arith.constant 64 : index
    %c128_65 = arith.constant 128 : index
    %59 = vector.load %arg6[%c64_64, %c128_65] : memref<128x256xbf16, #tpu.memory_space<vmem>>, vector<32x128xbf16>
    tpu.vector_store %arg6[%c64_64, %c128_65], %58 {strides = array<i32>} : memref<128x256xbf16, #tpu.memory_space<vmem>>, vector<32x128xbf16>,
    %c1_66 = arith.constant 1 : index
    %c0_67 = arith.constant 0 : index
    %c0_68 = arith.constant 0 : index
    %60 = vector.load %arg2[%c1_66, %c0_67, %c0_68] : memref<2x32x128xbf16, #tpu.memory_space<vmem>>, vector<1x32x128xbf16>
    %61 = vector.shape_cast %60 : vector<1x32x128xbf16> to vector<32x128xbf16>
    %c0_69 = arith.constant 0 : index
    %c0_70 = arith.constant 0 : index
    %62 = vector.load %arg6[%c0_69, %c0_70] : memref<128x256xbf16, #tpu.memory_space<vmem>>, vector<128x256xbf16>
    %cst_71 = arith.constant dense<0.000000e+00> : vector<32x256xf32>
    %63 = tpu.matmul %61, %62, %cst_71 {dimension_numbers = #tpu.dot_dimension_numbers<[1], [0], [0], [1], [0, 0, 1, 1], [], []>} : vector<32x128xbf16>, vector<128x256xbf16>, vector<32x256xf32> -> vector<32x256xf32>
    %c1_72 = arith.constant 1 : index
    %c0_73 = arith.constant 0 : index
    %c0_74 = arith.constant 0 : index
    %64 = vector.load %arg3[%c1_72, %c0_73, %c0_74] : memref<2x32x1xf32, #tpu.memory_space<vmem>>, vector<1x32x1xf32>
    %65 = vector.shape_cast %64 : vector<1x32x1xf32> to vector<32x1xf32>
    %66 = vector.broadcast %65 : vector<32x1xf32> to vector<32x256xf32>
    %67 = arith.addf %63, %66 : vector<32x256xf32>
    %cst_75 = arith.constant 0.000000e+00 : f32
    %68 = vector.broadcast %cst_75 : f32 to vector<32x256xf32>
    %69 = arith.maximumf %67, %68 : vector<32x256xf32>
    %70 = vector.extract_strided_slice %69 {offsets = [0, 0], sizes = [32, 128], strides = [1, 1]} : vector<32x256xf32> to vector<32x128xf32>
    %c0_76 = arith.constant 0 : index
    %c0_77 = arith.constant 0 : index
    %c0_78 = arith.constant 0 : index
    %71 = vector.load %arg4[%c0_76, %c0_77, %c0_78] : memref<2x32x128xf32, #tpu.memory_space<vmem>>, vector<1x32x128xf32>
    %72 = vector.shape_cast %71 : vector<1x32x128xf32> to vector<32x128xf32>
    %73 = vector.shape_cast %70 : vector<32x128xf32> to vector<1x32x128xf32>
    tpu.vector_store %arg4[%c0_76, %c0_77, %c0_78], %73 {strides = array<i32>} : memref<2x32x128xf32, #tpu.memory_space<vmem>>, vector<1x32x128xf32>,
    %74 = vector.extract_strided_slice %69 {offsets = [0, 128], sizes = [32, 128], strides = [1, 1]} : vector<32x256xf32> to vector<32x128xf32>
    %c1_79 = arith.constant 1 : index
    %c0_80 = arith.constant 0 : index
    %c0_81 = arith.constant 0 : index
    %75 = vector.load %arg4[%c1_79, %c0_80, %c0_81] : memref<2x32x128xf32, #tpu.memory_space<vmem>>, vector<1x32x128xf32>
    %76 = vector.shape_cast %75 : vector<1x32x128xf32> to vector<32x128xf32>
    %77 = vector.shape_cast %74 : vector<32x128xf32> to vector<1x32x128xf32>
    tpu.vector_store %arg4[%c1_79, %c0_80, %c0_81], %77 {strides = array<i32>} : memref<2x32x128xf32, #tpu.memory_space<vmem>>, vector<1x32x128xf32>,
    return
  }
  func.func @transform_0(%arg0: i32) -> (i32, i32, i32) {
    %c0_i32 = arith.constant 0 : i32
    %c0_i32_0 = arith.constant 0 : i32
    %c0_i32_1 = arith.constant 0 : i32
    return %arg0, %c0_i32, %c0_i32_0 : i32, i32, i32
  }
  func.func @transform_1(%arg0: i32) -> (i32, i32, i32) {
    %c0_i32 = arith.constant 0 : i32
    %c0_i32_0 = arith.constant 0 : i32
    %c0_i32_1 = arith.constant 0 : i32
    %c0_i32_2 = arith.constant 0 : i32
    return %c0_i32, %c0_i32_0, %c0_i32_1 : i32, i32, i32
  }
  func.func @transform_2(%arg0: i32) -> (i32, i32, i32) {
    %c0_i32 = arith.constant 0 : i32
    %c0_i32_0 = arith.constant 0 : i32
    %c0_i32_1 = arith.constant 0 : i32
    %c0_i32_2 = arith.constant 0 : i32
    return %c0_i32, %c0_i32_0, %c0_i32_1 : i32, i32, i32
  }
  func.func @transform_3(%arg0: i32) -> (i32, i32, i32) {
    %c0_i32 = arith.constant 0 : i32
    %c0_i32_0 = arith.constant 0 : i32
    %c0_i32_1 = arith.constant 0 : i32
    return %arg0, %c0_i32, %c0_i32_0 : i32, i32, i32
  }
}

</mosaic_0001>

<bundles_post_ra>
// kernel: tpu_custom_call.1
= control target key start
LH: loop header
LB: loop body
LE: loop exit
PB: predicated region body
PF: predicated region fallthrough
CT: control target
= control target key end

     0   :  { %8 = vsyncpa [#allocation5], 0  ;;  %s1250_s0 = inlined_call_operand.vmem [shape: f32[2,24,128], index: 0, kind: input, shape index: {}]   ;;  %s1251_s1 = inlined_call_operand.hbm [shape: bf16[2,32,128], index: 1, kind: input, shape index: {}]   ;;  %s1252_s2 = inlined_call_operand.vmem [shape: f32[2,32,1], index: 2, kind: input, shape index: {}]   ;;  %s1253_s3 = inlined_call_operand.hbm [shape: f32[2,32,128], index: 3, kind: output, shape index: {}]  }
   0x1   :  { %9 = vsyncpa [#allocation6], 0  ;;  %s16_s14 = sshll.u32 %s1251_s1, 4  ;;  %s1089_s15 = smov [#allocation4]   ;;  %s17_s14 = int_to_ptr.hbm [resolvable:$true] %s16_s14 }
   0x2   :  { %s18_s16 = sshll.u32 %s1089_s15, 4  ;;  %s1090_s17 = smov 64   ;;  %s19_s16 = int_to_ptr.vmem [resolvable:$true] %s18_s16 }
   0x3   :  { %s1091_s18 = smov 4  }
   0x4   :  { %24 = dma.hbm_to_vmem [thread:$0]  %s17_s14, 512, %s19_s16, [#allocation5], %s1090_s17, %s1090_s17, %s1091_s18  }
   0x5   :  { %1085 = dma.done.wait [#allocation5], 512  }
   0x6   :  { %1086 = vsyncadd [#allocation5], 4294966784  ;;  %v1092_v0 = vmov 0.0|0.0   ;;  %s1093_s19 = smov 2   ;;  %v839_v1 = vld [vmem:[%s1250_s0 + $0x28] sm:$0xff]  ;;  %v54_v2 = vld [vmem:[%s1250_s0 + $0x10] sm:$0xff] }
   0x7   :  { %168 = vrot.lane.b32.xlu0 %v1092_v0, %s1093_s19  ;;  %238 = vst [vmem:[#allocation3 + $0x58] sm:$0xf] %v1092_v0  ;;  %209 = vrot.lane.b32.xlu1 %v1092_v0, %s1093_s19  ;;  %v1094_v3 = vmov 0.0   ;;  %v245_v5 = vpack.c.bf16 %v839_v1, %v839_v1  ;;  %v233_v7 = vpack.c.bf16 %v54_v2, %v54_v2  ;;  %v838_v8 = vld [vmem:[%s1250_s0 + $0x20] sm:$0xff]  ;;  %v837_v9 = vld [vmem:[%s1250_s0 + $0x18] sm:$0xff]  ;;  %v1095_v20 = vmov 0  }
   0x8   :  { %250 = vst [vmem:[#allocation3 + $0x5c] sm:$0xf] %v1092_v0  ;;  %v116_v4 = vpack.c.bf16 %v839_v1, %v1094_v3  ;;  %v75_v6 = vpack.c.bf16 %v54_v2, %v1094_v3  ;;  %v52_v10 = vld [vmem:[%s1250_s0] sm:$0xff]  ;;  %v244_v11 = vpack.c.bf16 %v838_v8, %v838_v8  ;;  %v243_v12 = vpack.c.bf16 %v837_v9, %v837_v9  ;;  %v53_v15 = vld [vmem:[%s1250_s0 + $0x8] sm:$0xff]  ;;  %s824_s21 = sshll.u32 %s1253_s3, 4  ;;  %s1097_s22 = smov 128   ;;  %s825_s21 = int_to_ptr.hbm [resolvable:$true] %s824_s21 }
   0x9   :  { %249 = vst [vmem:[#allocation3 + $0x54] sm:$0xf] %v245_v5  ;;  %v73_v13 = vpack.c.bf16 %v52_v10, %v1094_v3  ;;  %v231_v14 = vpack.c.bf16 %v52_v10, %v52_v10  ;;  %v232_v16 = vpack.c.bf16 %v53_v15, %v53_v15  ;;  %v115_v17 = vpack.c.bf16 %v838_v8, %v1094_v3  ;;  %s1098_s23 = smov 8  }
   0xa   :  { %237 = vst [vmem:[#allocation3 + $0x50] sm:$0xf] %v233_v7  ;;  %v114_v18 = vpack.c.bf16 %v837_v9, %v1094_v3  ;;  %v74_v19 = vpack.c.bf16 %v53_v15, %v1094_v3  ;;  %1036 = vset.pattern.permute.xlu0 %v1095_v20  ;;  %1034 = vset.pattern.permute.xlu1 %v1095_v20  ;;  %vm174_vm0 = vcmask 15360   ;;  %vm93_vm1 = vcmask 31744  }
   0xb   :  { %248 = vst [vmem:[#allocation3 + $0x4c] sm:$0xf] %v244_v11  ;;  %162 = vrot.lane.b32.xlu2 %v73_v13, %s1093_s19 }
   0xc   :  { %247 = vst [vmem:[#allocation3 + $0x44] sm:$0xf] %v243_v12  ;;  %1035 = vset.pattern.permute.xlu2 %v1095_v20 }
   0xd   :  { %235 = vst [vmem:[#allocation3 + $0x40] sm:$0xf] %v231_v14 }
   0xe   :  { %236 = vst [vmem:[#allocation3 + $0x48] sm:$0xf] %v232_v16  ;;  %v1001_v34 = vld [vmem:[#allocation3 + $0x54] sm:$0xf0] }
   0xf   :  { %207 = vrot.lane.b32.xlu1 %v116_v4, %s1093_s19  ;;  %166 = vrot.lane.b32.xlu0 %v75_v6, %s1093_s19  ;;  %50 = vst [vmem:[#allocation3 + $0x70] sm:$0xff] %v1095_v20  ;;  %v892_v37 = vld [vmem:[#allocation3 + $0x58] sm:$0xf0] }
  0x10   :  { %51 = vst [vmem:[#allocation3 + $0x78] sm:$0xff] %v1095_v20  ;;  %v1000_v35 = vld [vmem:[#allocation3 + $0x54] sm:$0xf] }
  0x11   :  { %48 = vst [vmem:[#allocation3 + $0x60] sm:$0xff] %v1095_v20  ;;  %v890_v33 = vld [vmem:[#allocation3 + $0x50] sm:$0xf]  ;;  %v895_v38 = vor.u32 %v1000_v35, %v892_v37 }
  0x12   :  { %49 = vst [vmem:[#allocation3 + $0x68] sm:$0xff] %v1095_v20  ;;  %v891_v36 = vor.u32 %v1001_v34, %v890_v33  ;;  %v884_v43 = vld [vmem:[#allocation3 + $0x48] sm:$0xf0] }
  0x13   :  { %164 = vrot.lane.b32.xlu2 %v74_v19, %s1093_s19  ;;  %v998_v41 = vld [vmem:[#allocation3 + $0x44] sm:$0xf] }
  0x14   :  { %v882_v39 = vld [vmem:[#allocation3 + $0x40] sm:$0xf]  ;;  %v887_v45 = vor.u32 %v998_v41, %v884_v43 }
  0x15   :  { %v999_v40 = vld [vmem:[#allocation3 + $0x44] sm:$0xf0] }
  0x16   :  { %v906_v21 = vld [vmem:[#allocation3 + $0x70] sm:$0xf]  ;;  %v1004_v22 = vld [vmem:[#allocation3 + $0x74] sm:$0xf]  ;;  %v883_v42 = vor.u32 %v999_v40, %v882_v39  ;;  %v272_v40 = vld [vmem:[%s1252_s2 + $0x8] sm:$0xff] }
  0x17   :  { %205 = vrot.lane.b32.xlu1 %v115_v17, %s1093_s19  ;;  %203 = vrot.lane.b32.xlu0 %v114_v18, %s1093_s19  ;;  %v1005_v23 = vld [vmem:[#allocation3 + $0x74] sm:$0xf0]  ;;  %v908_v24 = vld [vmem:[#allocation3 + $0x78] sm:$0xf0] }
  0x18   :  { %v907_v25 = vor.u32 %v1005_v23, %v906_v21  ;;  %v911_v26 = vor.u32 %v1004_v22, %v908_v24  ;;  %v898_v27 = vld [vmem:[#allocation3 + $0x60] sm:$0xf]  ;;  %v1002_v29 = vld [vmem:[#allocation3 + $0x64] sm:$0xf] }
  0x19   :  { %v1003_v28 = vld [vmem:[#allocation3 + $0x64] sm:$0xf0]  ;;  %v900_v31 = vld [vmem:[#allocation3 + $0x68] sm:$0xf0] }
  0x1a   :  { %387 = vmatpush.bf16.msra.mxu0 %v907_v25  ;;  %406 = vmatpush.bf16.msra.mxu1 %v911_v26  ;;  %v899_v30 = vor.u32 %v1003_v28, %v898_v27  ;;  %v903_v32 = vor.u32 %v1002_v29, %v900_v31  ;;  %v273_v28 = vld [vmem:[%s1252_s2 + $0x10] sm:$0xff]  ;;  %v271_v29 = vld [vmem:[%s1252_s2] sm:$0xff] }
  0x1b   :  { %85 = vrot.lane.b32.xlu2 %v75_v6, %s1091_s18 }
  0x1e   :  { %388 = vmatpush.bf16.msra.mxu0 %v899_v30  ;;  %407 = vmatpush.bf16.msra.mxu1 %v903_v32 }
  0x1f   :  { %126 = vrot.lane.b32.xlu1 %v116_v4, %s1091_s18  ;;  %87 = vrot.lane.b32.xlu0 %v1092_v0, %s1091_s18 }
  0x22   :  { %389 = vmatpush.bf16.msra.mxu0 %v891_v36  ;;  %408 = vmatpush.bf16.msra.mxu1 %v895_v38 }
  0x23   :  { %128 = vrot.lane.b32.xlu2 %v1092_v0, %s1091_s18 }
  0x26   :  { %390 = vmatpush.bf16.msra.mxu0 %v883_v42  ;;  %409 = vmatpush.bf16.msra.mxu1 %v887_v45 }
  0x27   :  { %83 = vrot.lane.b32.xlu1 %v74_v19, %s1091_s18  ;;  %81 = vrot.lane.b32.xlu0 %v73_v13, %s1091_s18 }
  0x2b   :  { %122 = vrot.lane.b32.xlu2 %v114_v18, %s1091_s18 }
  0x2f   :  { %124 = vrot.lane.b32.xlu0 %v115_v17, %s1091_s18  ;;  %287 = vperm.xlu1 %1034, %v273_v28  }
  0x37   :  { %277 = vperm.xlu0 %1036, %v271_v29   ;;  %282 = vperm.xlu1 %1034, %v272_v40  }
  0x65   :  { %v163_v44 = vpop.permute.xlu2 %162 }
  0x66   :  { %v170_v46 = vrot.slane %v163_v44, 4 }
  0x68   :  { %v175_v47 = vsel %vm174_vm0, %v163_v44, %v170_v46 }
  0x69   :  { %183 = vst [vmem:[#allocation3 + $0x20] sm:$0xf] %v175_v47 }
  0x6d   :  { %v165_v48 = vpop.permute.xlu2 %164 }
  0x6e   :  { %v171_v49 = vrot.slane %v165_v48, 4 }
  0x70   :  { %v176_v50 = vsel %vm174_vm0, %v165_v48, %v171_v49  ;;  %v866_v21 = vld [vmem:[#allocation3 + $0x20] sm:$0xf] }
  0x71   :  { %184 = vst [vmem:[#allocation3 + $0x28] sm:$0xf] %v176_v50  ;;  %v274_v50 = vld [vmem:[%s1252_s2 + $0x18] sm:$0xff] }
  0x72   :  { %292 = vperm.xlu2 %1035, %v274_v50  }
  0x75   :  { %v86_v57 = vpop.permute.xlu2 %85 }
  0x76   :  { %v91_v58 = vrot.slane %v86_v57, 4 }
  0x78   :  { %v96_v59 = vsel %vm93_vm1, %v86_v57, %v91_v58  ;;  %v995_v22 = vld [vmem:[#allocation3 + $0x24] sm:$0xf0] }
  0x79   :  { %v169_v51 = vpop.permute.xlu0 %168  ;;  %v210_v52 = vpop.permute.xlu1 %209  ;;  %104 = vst [vmem:[#allocation3 + $0x10] sm:$0xf] %v96_v59  ;;  %v867_v27 = vor.u32 %v995_v22, %v866_v21  ;;  %v989_v59 = vld [vmem:[#allocation4 + $0x8] sm:$0xff] }
  0x7a   :  { %v173_v53 = vrot.slane %v169_v51, 4  ;;  %v214_v54 = vrot.slane %v210_v52, 4 }
  0x7c   :  { %v178_v55 = vsel %vm174_vm0, %v169_v51, %v173_v53  ;;  %v218_v56 = vsel %vm174_vm0, %v210_v52, %v214_v54 }
  0x7d   :  { %186 = vst [vmem:[#allocation3 + $0x38] sm:$0xf] %v178_v55  ;;  %v129_v0 = vpop.permute.xlu2 %128  ;;  %v988_v55 = vld [vmem:[#allocation4] sm:$0xff] }
  0x7e   :  { %226 = vst [vmem:[#allocation3 + $0x3c] sm:$0xf] %v218_v56  ;;  %v133_v4 = vrot.slane %v129_v0, 4 }
  0x80   :  { %v137_v5 = vsel %vm93_vm1, %v129_v0, %v133_v4  ;;  %v858_v44 = vld [vmem:[#allocation3 + $0x10] sm:$0xf]  ;;  %v974_v4 = vld [vmem:[#allocation3 + $0x60] sm:$0xf] }
  0x81   :  { %v208_v60 = vpop.permute.xlu1 %207  ;;  %v167_v61 = vpop.permute.xlu0 %166  ;;  %145 = vst [vmem:[#allocation3 + $0x1c] sm:$0xf] %v137_v5  ;;  %v1021_v5 = vld [vmem:[#allocation3 + $0x64] sm:$0xf0] }
  0x82   :  { %v213_v62 = vrot.slane %v208_v60, 4  ;;  %v172_v63 = vrot.slane %v167_v61, 4 }
  0x84   :  { %v217_v1 = vsel %vm174_vm0, %v208_v60, %v213_v62  ;;  %v177_v2 = vsel %vm174_vm0, %v167_v61, %v172_v63  ;;  %v997_v17 = vld [vmem:[#allocation3 + $0x34] sm:$0xf0]  ;;  %v982_v62 = vld [vmem:[#allocation3 + $0x70] sm:$0xf] }
  0x85   :  { %225 = vst [vmem:[#allocation3 + $0x34] sm:$0xf] %v217_v1  ;;  %v123_v10 = vpop.permute.xlu2 %122  ;;  %v876_v14 = vld [vmem:[#allocation3 + $0x38] sm:$0xf0]  ;;  %v1023_v63 = vld [vmem:[#allocation3 + $0x74] sm:$0xf0] }
  0x86   :  { %185 = vst [vmem:[#allocation3 + $0x30] sm:$0xf] %v177_v2  ;;  %v130_v15 = vrot.slane %v123_v10, 4  ;;  %v983_v0 = vor.u32 %v1023_v63, %v982_v62 }
  0x88   :  { %v134_v20 = vsel %vm93_vm1, %v123_v10, %v130_v15  ;;  %v860_v39 = vld [vmem:[#allocation3 + $0x18] sm:$0xf0]  ;;  %763 = vmatpush.bf16.msra.mxu2 %v983_v0  ;;  %v912_v0 = vld [vmem:[%s1252_s2 + $0x20] sm:$0xff] }
  0x89   :  { %v206_v6 = vpop.permute.xlu1 %205  ;;  %v204_v7 = vpop.permute.xlu0 %203  ;;  %142 = vst [vmem:[#allocation3 + $0x4] sm:$0xf] %v134_v20  ;;  %v976_v20 = vld [vmem:[#allocation3 + $0x68] sm:$0xf0] }
  0x8a   :  { %v212_v8 = vrot.slane %v206_v6, 4  ;;  %v211_v9 = vrot.slane %v204_v7, 4 }
  0x8c   :  { %v216_v11 = vsel %vm174_vm0, %v206_v6, %v212_v8  ;;  %v215_v12 = vsel %vm174_vm0, %v204_v7, %v211_v9  ;;  %v996_v13 = vld [vmem:[#allocation3 + $0x34] sm:$0xf]  ;;  %v975_v7 = vor.u32 %v1021_v5, %v974_v4  ;;  %v913_v4 = vld [vmem:[%s1252_s2 + $0x28] sm:$0xff] }
  0x8d   :  { %224 = vst [vmem:[#allocation3 + $0x2c] sm:$0xf] %v216_v11  ;;  %v874_v16 = vld [vmem:[#allocation3 + $0x30] sm:$0xf]  ;;  %v879_v18 = vor.u32 %v996_v13, %v876_v14  ;;  %v1022_v11 = vld [vmem:[#allocation3 + $0x74] sm:$0xf] }
  0x8e   :  { %223 = vst [vmem:[#allocation3 + $0x24] sm:$0xf] %v215_v12  ;;  %v875_v19 = vor.u32 %v997_v17, %v874_v16  ;;  %764 = vmatpush.bf16.msra.mxu2 %v975_v7  ;;  %v984_v12 = vld [vmem:[#allocation3 + $0x78] sm:$0xf0] }
  0x8f   :  { %410 = vmatpush.bf16.msra.mxu1 %v879_v18  ;;  %v987_v14 = vor.u32 %v1022_v11, %v984_v12 }
  0x90   :  { %391 = vmatpush.bf16.msra.mxu0 %v875_v19  ;;  %v990_v56 = vld [vmem:[#allocation3 + $0x4] sm:$0xf] }
  0x91   :  { %v127_v23 = vpop.permute.xlu1 %126  ;;  %v88_v24 = vpop.permute.xlu0 %87  ;;  %782 = vmatpush.bf16.msra.mxu3 %v987_v14  ;;  %v1020_v19 = vld [vmem:[#allocation3 + $0x64] sm:$0xf] }
  0x92   :  { %v132_v25 = vrot.slane %v127_v23, 4  ;;  %v92_v26 = vrot.slane %v88_v24, 4  ;;  %v979_v22 = vor.u32 %v1020_v19, %v976_v20 }
  0x94   :  { %v136_v30 = vsel %vm93_vm1, %v127_v23, %v132_v25  ;;  %v97_v31 = vsel %vm93_vm1, %v88_v24, %v92_v26  ;;  %392 = vmatpush.bf16.msra.mxu0 %v867_v27  ;;  %v868_v32 = vld [vmem:[#allocation3 + $0x28] sm:$0xf0] }
  0x95   :  { %144 = vst [vmem:[#allocation3 + $0x14] sm:$0xf] %v136_v30  ;;  %v994_v33 = vld [vmem:[#allocation3 + $0x24] sm:$0xf]  ;;  %783 = vmatpush.bf16.msra.mxu3 %v979_v22 }
  0x96   :  { %105 = vst [vmem:[#allocation3 + $0x18] sm:$0xf] %v97_v31  ;;  %v871_v34 = vor.u32 %v994_v33, %v868_v32 }
  0x98   :  { %411 = vmatpush.bf16.msra.mxu1 %v871_v34 }
  0x99   :  { %v84_v35 = vpop.permute.xlu1 %83  ;;  %v82_v36 = vpop.permute.xlu0 %81 }
  0x9a   :  { %v90_v37 = vrot.slane %v84_v35, 4  ;;  %v89_v38 = vrot.slane %v82_v36, 4 }
  0x9c   :  { %v95_v41 = vsel %vm93_vm1, %v84_v35, %v90_v37  ;;  %v94_v42 = vsel %vm93_vm1, %v82_v36, %v89_v38  ;;  %v992_v43 = vld [vmem:[#allocation3 + $0x14] sm:$0xf] }
  0x9d   :  { %103 = vst [vmem:[#allocation3 + $0x8] sm:$0xf] %v95_v41  ;;  %v993_v45 = vld [vmem:[#allocation3 + $0x14] sm:$0xf0]  ;;  %v863_v46 = vor.u32 %v992_v43, %v860_v39 }
  0x9e   :  { %102 = vst [vmem:[#allocation3] sm:$0xf] %v94_v42  ;;  %v859_v47 = vor.u32 %v993_v45, %v858_v44 }
  0x9f   :  { %412 = vmatpush.bf16.msra.mxu1 %v863_v46 }
  0xa0   :  { %393 = vmatpush.bf16.msra.mxu0 %v859_v47 }
  0xa1   :  { %v125_v48 = vpop.permute.xlu0 %124  ;;  %v288_v60 = vpop.permute.xlu1 %287 }
  0xa2   :  { %v131_v49 = vrot.slane %v125_v48, 4 }
  0xa4   :  { %v135_v51 = vsel %vm93_vm1, %v125_v48, %v131_v49  ;;  %v991_v52 = vld [vmem:[#allocation3 + $0x4] sm:$0xf0] }
  0xa5   :  { %143 = vst [vmem:[#allocation3 + $0xc] sm:$0xf] %v135_v51  ;;  %v850_v53 = vld [vmem:[#allocation3] sm:$0xf] }
  0xa6   :  { %v851_v54 = vor.u32 %v991_v52, %v850_v53 }
  0xa8   :  { %394 = vmatpush.bf16.msra.mxu0 %v851_v54 }
  0xa9   :  { %v278_v61 = vpop.permute.xlu0 %277  ;;  %v283_v10 = vpop.permute.xlu1 %282 }
  0xab   :  { %395 = vmatmul.bf16.vlgmr.msra.gmra.mxu0 %v988_v55 }
  0xac   :  { %v852_v57 = vld [vmem:[#allocation3 + $0x8] sm:$0xf0] }
  0xad   :  { %v855_v58 = vor.u32 %v990_v56, %v852_v57 }
  0xaf   :  { %413 = vmatpush.bf16.msra.mxu1 %v855_v58 }
  0xb2   :  { %414 = vmatmul.bf16.vlgmr.msra.gmra.mxu1 %v988_v55 }
  0xbb   :  { %400 = vmatmul.bf16.gmra.mxu0 %v989_v59 }
  0xc2   :  { %419 = vmatmul.bf16.gmra.mxu1 %v989_v59 }
  0xcc   :  { %v293_v37 = vpop.permute.xlu2 %292 }
 0x128   :  { %v396_v1 = vpop.f32.mrf.mxu0 }
 0x129   :  { %v397_v2 = vadd.f32 %v396_v1, %v278_v61  ;;  %v914_v1 = vld [vmem:[%s1252_s2 + $0x30] sm:$0xff] }
 0x12b   :  { %v425_v6 = vmax.f32 %v397_v2, 0.0  ;;  %v915_v2 = vld [vmem:[%s1252_s2 + $0x38] sm:$0xff]  ;;  %s1096_s2 = smov [#allocation7]  }
 0x12d   :  { %v449_v8 = vpack.c.bf16 %v425_v6, %v1094_v3  ;;  %v605_v9 = vpack.c.bf16 %v425_v6, %v425_v6 }
 0x12f   :  { %609 = vst [vmem:[#allocation3 + $0x40] sm:$0xf] %v605_v9  ;;  %537 = vrot.lane.b32.xlu1 %v449_v8, %s1093_s19  ;;  %v415_v13 = vpop.f32.mrf.mxu1 }
 0x130   :  { %v398_v15 = vpop.f32.mrf.mxu0  ;;  %v416_v16 = vadd.f32 %v415_v13, %v278_v61 }
 0x131   :  { %v399_v17 = vadd.f32 %v398_v15, %v283_v10 }
 0x132   :  { %v426_v18 = vmax.f32 %v416_v16, 0.0 }
 0x133   :  { %v427_v21 = vmax.f32 %v399_v17, 0.0 }
 0x134   :  { %v1194_v23 = vpack.c.bf16 %v426_v18, %v1094_v3  ;;  %v617_v24 = vpack.c.bf16 %v426_v18, %v426_v18 }
 0x135   :  { %v450_v25 = vpack.c.bf16 %v427_v21, %v1094_v3  ;;  %v606_v26 = vpack.c.bf16 %v427_v21, %v427_v21 }
 0x136   :  { %621 = vst [vmem:[#allocation3 + $0x44] sm:$0xf] %v617_v24  ;;  %577 = vrot.lane.b32.xlu0 %v1194_v23, %s1093_s19  ;;  %v958_v56 = vld [vmem:[#allocation3 + $0x40] sm:$0xf] }
 0x137   :  { %610 = vst [vmem:[#allocation3 + $0x48] sm:$0xf] %v606_v26  ;;  %539 = vrot.lane.b32.xlu2 %v450_v25, %s1093_s19  ;;  %v417_v27 = vpop.f32.mrf.mxu1 }
 0x138   :  { %v401_v28 = vpop.f32.mrf.mxu0  ;;  %v418_v29 = vadd.f32 %v417_v27, %v283_v10 }
 0x139   :  { %v402_v30 = vadd.f32 %v401_v28, %v288_v60 }
 0x13a   :  { %v428_v31 = vmax.f32 %v418_v29, 0.0 }
 0x13b   :  { %v429_v32 = vmax.f32 %v402_v30, 0.0 }
 0x13c   :  { %v490_v33 = vpack.c.bf16 %v428_v31, %v1094_v3  ;;  %v618_v34 = vpack.c.bf16 %v428_v31, %v428_v31 }
 0x13d   :  { %v451_v35 = vpack.c.bf16 %v429_v32, %v1094_v3  ;;  %v607_v36 = vpack.c.bf16 %v429_v32, %v429_v32  ;;  %v1016_v62 = vld [vmem:[#allocation3 + $0x44] sm:$0xf] }
 0x13e   :  { %622 = vst [vmem:[#allocation3 + $0x4c] sm:$0xf] %v618_v34  ;;  %579 = vrot.lane.b32.xlu1 %v490_v33, %s1093_s19  ;;  %457 = vrot.lane.b32.xlu0 %v449_v8, %s1091_s18  ;;  %v1017_v57 = vld [vmem:[#allocation3 + $0x44] sm:$0xf0] }
 0x13f   :  { %611 = vst [vmem:[#allocation3 + $0x50] sm:$0xf] %v607_v36  ;;  %541 = vrot.lane.b32.xlu2 %v451_v35, %s1093_s19  ;;  %v420_v38 = vpop.f32.mrf.mxu1  ;;  %v959_v58 = vor.u32 %v1017_v57, %v958_v56 }
 0x140   :  { %v403_v39 = vpop.f32.mrf.mxu0  ;;  %v421_v40 = vadd.f32 %v420_v38, %v288_v60 }
 0x141   :  { %v404_v41 = vadd.f32 %v403_v39, %v293_v37 }
 0x142   :  { %v430_v42 = vmax.f32 %v421_v40, 0.0 }
 0x143   :  { %v431_v43 = vmax.f32 %v404_v41, 0.0 }
 0x144   :  { %v491_v44 = vpack.c.bf16 %v430_v42, %v1094_v3  ;;  %v619_v45 = vpack.c.bf16 %v430_v42, %v430_v42 }
 0x145   :  { %v452_v46 = vpack.c.bf16 %v431_v43, %v1094_v3  ;;  %v608_v47 = vpack.c.bf16 %v431_v43, %v431_v43  ;;  %v960_v61 = vld [vmem:[#allocation3 + $0x48] sm:$0xf0] }
 0x146   :  { %623 = vst [vmem:[#allocation3 + $0x54] sm:$0xf] %v619_v45  ;;  %v966_v53 = vld [vmem:[#allocation3 + $0x50] sm:$0xf]  ;;  %v963_v63 = vor.u32 %v1016_v62, %v960_v61 }
 0x147   :  { %612 = vst [vmem:[#allocation3 + $0x58] sm:$0xf] %v608_v47  ;;  %581 = vrot.lane.b32.xlu2 %v491_v44, %s1093_s19  ;;  %543 = vrot.lane.b32.xlu1 %v452_v46, %s1093_s19  ;;  %v422_v48 = vpop.f32.mrf.mxu1 }
 0x148   :  { %v423_v49 = vadd.f32 %v422_v48, %v293_v37 }
 0x14a   :  { %v432_v50 = vmax.f32 %v423_v49, 0.0 }
 0x14c   :  { %v492_v51 = vpack.c.bf16 %v432_v50, %v1094_v3  ;;  %v620_v52 = vpack.c.bf16 %v432_v50, %v432_v50 }
 0x14d   :  { %v1018_v59 = vld [vmem:[#allocation3 + $0x54] sm:$0xf] }
 0x14e   :  { %624 = vst [vmem:[#allocation3 + $0x5c] sm:$0xf] %v620_v52  ;;  %583 = vrot.lane.b32.xlu0 %v492_v51, %s1093_s19  ;;  %v1019_v54 = vld [vmem:[#allocation3 + $0x54] sm:$0xf0] }
 0x14f   :  { %461 = vrot.lane.b32.xlu2 %v451_v35, %s1091_s18  ;;  %501 = vrot.lane.b32.xlu1 %v491_v44, %s1091_s18  ;;  %v967_v55 = vor.u32 %v1019_v54, %v966_v53 }
 0x151   :  { %765 = vmatpush.bf16.msra.mxu2 %v967_v55 }
 0x155   :  { %766 = vmatpush.bf16.msra.mxu2 %v959_v58  ;;  %v968_v60 = vld [vmem:[#allocation3 + $0x58] sm:$0xf0] }
 0x156   :  { %463 = vrot.lane.b32.xlu0 %v452_v46, %s1091_s18  ;;  %v971_v3 = vor.u32 %v1018_v59, %v968_v60 }
 0x157   :  { %503 = vrot.lane.b32.xlu2 %v492_v51, %s1091_s18  ;;  %459 = vrot.lane.b32.xlu1 %v450_v25, %s1091_s18 }
 0x158   :  { %784 = vmatpush.bf16.msra.mxu3 %v971_v3 }
 0x15c   :  { %785 = vmatpush.bf16.msra.mxu3 %v963_v63 }
 0x15e   :  { %499 = vrot.lane.b32.xlu0 %v490_v33, %s1091_s18 }
 0x15f   :  { %653 = vperm.xlu1 %1034, %v912_v0   ;;  %497 = vrot.lane.b32.xlu2 %v1194_v23, %s1091_s18  ;;  %s822_s18 = sshll.u32 %s1096_s2, 4  ;;  %s823_s18 = int_to_ptr.vmem [resolvable:$true] %s822_s18 }
 0x166   :  { %663 = vperm.xlu0 %1036, %v914_v1  }
 0x167   :  { %668 = vperm.xlu1 %1034, %v915_v2   ;;  %658 = vperm.xlu2 %1035, %v913_v4  }
 0x191   :  { %v540_v5 = vpop.permute.xlu2 %539 }
 0x192   :  { %v546_v6 = vrot.slane %v540_v5, 4 }
 0x194   :  { %v550_v7 = vsel %vm174_vm0, %v540_v5, %v546_v6 }
 0x195   :  { %558 = vst [vmem:[#allocation3 + $0x28] sm:$0xf] %v550_v7 }
 0x199   :  { %v542_v8 = vpop.permute.xlu2 %541 }
 0x19a   :  { %v547_v9 = vrot.slane %v542_v8, 4 }
 0x19c   :  { %v551_v10 = vsel %vm174_vm0, %v542_v8, %v547_v9  ;;  %v1013_v49 = vld [vmem:[#allocation3 + $0x24] sm:$0xf0] }
 0x19d   :  { %559 = vst [vmem:[#allocation3 + $0x30] sm:$0xf] %v551_v10  ;;  %v1006_v10 = vld [vmem:[#allocation4 + $0x10] sm:$0xff] }
 0x1a1   :  { %v538_v11 = vpop.permute.xlu1 %537  ;;  %v582_v12 = vpop.permute.xlu2 %581 }
 0x1a2   :  { %v545_v13 = vrot.slane %v538_v11, 4  ;;  %v587_v14 = vrot.slane %v582_v12, 4 }
 0x1a4   :  { %v549_v15 = vsel %vm174_vm0, %v538_v11, %v545_v13  ;;  %v591_v16 = vsel %vm174_vm0, %v582_v12, %v587_v14  ;;  %v950_v44 = vld [vmem:[#allocation3 + $0x30] sm:$0xf]  ;;  %v1007_v14 = vld [vmem:[#allocation4 + $0x18] sm:$0xff] }
 0x1a5   :  { %557 = vst [vmem:[#allocation3 + $0x20] sm:$0xf] %v549_v15 }
 0x1a6   :  { %599 = vst [vmem:[#allocation3 + $0x34] sm:$0xf] %v591_v16 }
 0x1a8   :  { %v578_v17 = vpop.permute.xlu0 %577 }
 0x1a9   :  { %v462_v18 = vpop.permute.xlu2 %461  ;;  %v585_v19 = vrot.slane %v578_v17, 4 }
 0x1aa   :  { %v467_v20 = vrot.slane %v462_v18, 4 }
 0x1ab   :  { %v589_v21 = vsel %vm174_vm0, %v578_v17, %v585_v19 }
 0x1ac   :  { %v471_v22 = vsel %vm93_vm1, %v462_v18, %v467_v20  ;;  %597 = vst [vmem:[#allocation3 + $0x24] sm:$0xf] %v589_v21  ;;  %v942_v47 = vld [vmem:[#allocation3 + $0x20] sm:$0xf] }
 0x1ad   :  { %479 = vst [vmem:[#allocation3 + $0x10] sm:$0xf] %v471_v22  ;;  %v943_v52 = vor.u32 %v1013_v49, %v942_v47  ;;  %v1014_v55 = vld [vmem:[#allocation3 + $0x34] sm:$0xf] }
 0x1b0   :  { %v580_v23 = vpop.permute.xlu1 %579  ;;  %v458_v24 = vpop.permute.xlu0 %457 }
 0x1b1   :  { %v504_v25 = vpop.permute.xlu2 %503  ;;  %v586_v26 = vrot.slane %v580_v23, 4  ;;  %v465_v27 = vrot.slane %v458_v24, 4 }
 0x1b2   :  { %v508_v28 = vrot.slane %v504_v25, 4 }
 0x1b3   :  { %v590_v29 = vsel %vm174_vm0, %v580_v23, %v586_v26  ;;  %v469_v30 = vsel %vm93_vm1, %v458_v24, %v465_v27  ;;  %v1012_v60 = vld [vmem:[#allocation3 + $0x24] sm:$0xf] }
 0x1b4   :  { %v512_v31 = vsel %vm93_vm1, %v504_v25, %v508_v28  ;;  %598 = vst [vmem:[#allocation3 + $0x2c] sm:$0xf] %v590_v29  ;;  %v934_v1 = vld [vmem:[#allocation3 + $0x10] sm:$0xf] }
 0x1b5   :  { %520 = vst [vmem:[#allocation3 + $0x1c] sm:$0xf] %v512_v31 }
 0x1b6   :  { %477 = vst [vmem:[#allocation3] sm:$0xf] %v469_v30 }
 0x1b9   :  { %v544_v32 = vpop.permute.xlu1 %543  ;;  %v498_v33 = vpop.permute.xlu2 %497 }
 0x1ba   :  { %v548_v34 = vrot.slane %v544_v32, 4  ;;  %v505_v35 = vrot.slane %v498_v33, 4 }
 0x1bb   :  { %v944_v59 = vld [vmem:[#allocation3 + $0x28] sm:$0xf0] }
 0x1bc   :  { %v552_v36 = vsel %vm174_vm0, %v544_v32, %v548_v34  ;;  %v509_v37 = vsel %vm93_vm1, %v498_v33, %v505_v35  ;;  %v947_v61 = vor.u32 %v1012_v60, %v944_v59  ;;  %v936_v4 = vld [vmem:[#allocation3 + $0x18] sm:$0xf0] }
 0x1bd   :  { %560 = vst [vmem:[#allocation3 + $0x38] sm:$0xf] %v552_v36  ;;  %v926_v8 = vld [vmem:[#allocation3] sm:$0xf] }
 0x1be   :  { %517 = vst [vmem:[#allocation3 + $0x4] sm:$0xf] %v509_v37 }
 0x1c0   :  { %v584_v38 = vpop.permute.xlu0 %583 }
 0x1c1   :  { %v502_v39 = vpop.permute.xlu1 %501  ;;  %v588_v40 = vrot.slane %v584_v38, 4  ;;  %v659_v22 = vpop.permute.xlu2 %658 }
 0x1c2   :  { %v507_v41 = vrot.slane %v502_v39, 4 }
 0x1c3   :  { %v592_v42 = vsel %vm174_vm0, %v584_v38, %v588_v40 }
 0x1c4   :  { %v511_v43 = vsel %vm93_vm1, %v502_v39, %v507_v41  ;;  %600 = vst [vmem:[#allocation3 + $0x3c] sm:$0xf] %v592_v42  ;;  %v1015_v45 = vld [vmem:[#allocation3 + $0x34] sm:$0xf0] }
 0x1c5   :  { %519 = vst [vmem:[#allocation3 + $0x14] sm:$0xf] %v511_v43  ;;  %v951_v46 = vor.u32 %v1015_v45, %v950_v44  ;;  %v1008_v11 = vld [vmem:[#allocation3 + $0x4] sm:$0xf] }
 0x1c7   :  { %767 = vmatpush.bf16.msra.mxu2 %v951_v46 }
 0x1c8   :  { %v464_v48 = vpop.permute.xlu0 %463 }
 0x1c9   :  { %v460_v50 = vpop.permute.xlu1 %459  ;;  %v468_v51 = vrot.slane %v464_v48, 4 }
 0x1ca   :  { %v466_v53 = vrot.slane %v460_v50, 4 }
 0x1cb   :  { %v472_v54 = vsel %vm93_vm1, %v464_v48, %v468_v51  ;;  %768 = vmatpush.bf16.msra.mxu2 %v943_v52  ;;  %v952_v56 = vld [vmem:[#allocation3 + $0x38] sm:$0xf0] }
 0x1cc   :  { %v470_v57 = vsel %vm93_vm1, %v460_v50, %v466_v53  ;;  %480 = vst [vmem:[#allocation3 + $0x18] sm:$0xf] %v472_v54  ;;  %v955_v58 = vor.u32 %v1014_v55, %v952_v56  ;;  %v1010_v63 = vld [vmem:[#allocation3 + $0x14] sm:$0xf] }
 0x1cd   :  { %478 = vst [vmem:[#allocation3 + $0x8] sm:$0xf] %v470_v57  ;;  %v939_v6 = vor.u32 %v1010_v63, %v936_v4 }
 0x1ce   :  { %786 = vmatpush.bf16.msra.mxu3 %v955_v58 }
 0x1d0   :  { %v500_v3 = vpop.permute.xlu0 %499 }
 0x1d1   :  { %v506_v62 = vrot.slane %v500_v3, 4  ;;  %v654_v15 = vpop.permute.xlu1 %653 }
 0x1d2   :  { %787 = vmatpush.bf16.msra.mxu3 %v947_v61 }
 0x1d3   :  { %v510_v0 = vsel %vm93_vm1, %v500_v3, %v506_v62  ;;  %v1011_v2 = vld [vmem:[#allocation3 + $0x14] sm:$0xf0] }
 0x1d4   :  { %518 = vst [vmem:[#allocation3 + $0xc] sm:$0xf] %v510_v0  ;;  %v935_v5 = vor.u32 %v1011_v2, %v934_v1  ;;  %v1009_v7 = vld [vmem:[#allocation3 + $0x4] sm:$0xf0] }
 0x1d5   :  { %v927_v9 = vor.u32 %v1009_v7, %v926_v8 }
 0x1d6   :  { %769 = vmatpush.bf16.msra.mxu2 %v935_v5  ;;  %788 = vmatpush.bf16.msra.mxu3 %v939_v6 }
 0x1d8   :  { %v664_v29 = vpop.permute.xlu0 %663 }
 0x1d9   :  { %v669_v36 = vpop.permute.xlu1 %668 }
 0x1da   :  { %770 = vmatpush.bf16.msra.mxu2 %v927_v9 }
 0x1db   :  { %v928_v12 = vld [vmem:[#allocation3 + $0x8] sm:$0xf0] }
 0x1dc   :  { %v931_v13 = vor.u32 %v1008_v11, %v928_v12 }
 0x1dd   :  { %771 = vmatmul.bf16.vlgmr.msra.gmra.mxu2 %v1006_v10 }
 0x1de   :  { %789 = vmatpush.bf16.msra.mxu3 %v931_v13 }
 0x1e1   :  { %790 = vmatmul.bf16.vlgmr.msra.gmra.mxu3 %v1006_v10 }
 0x1ed   :  { %776 = vmatmul.bf16.gmra.mxu2 %v1007_v14 }
 0x1f1   :  { %795 = vmatmul.bf16.gmra.mxu3 %v1007_v14 }
 0x260   :  { %v772_v16 = vpop.f32.mrf.mxu2 }
 0x261   :  { %v773_v17 = vadd.f32 %v772_v16, %v654_v15 }
 0x263   :  { %v801_v18 = vmax.f32 %v773_v17, 0.0 }
 0x264   :  { %v791_v19 = vpop.f32.mrf.mxu3 }
 0x265   :  { %809 = vst [vmem:[#allocation7] sm:$0xff] %v801_v18  ;;  %v792_v20 = vadd.f32 %v791_v19, %v654_v15 }
 0x267   :  { %v802_v21 = vmax.f32 %v792_v20, 0.0 }
 0x268   :  { %v774_v23 = vpop.f32.mrf.mxu2 }
 0x269   :  { %814 = vst [vmem:[#allocation7 + $0x20] sm:$0xff] %v802_v21  ;;  %v775_v24 = vadd.f32 %v774_v23, %v659_v22 }
 0x26b   :  { %v803_v25 = vmax.f32 %v775_v24, 0.0 }
 0x26c   :  { %v793_v26 = vpop.f32.mrf.mxu3 }
 0x26d   :  { %810 = vst [vmem:[#allocation7 + $0x8] sm:$0xff] %v803_v25  ;;  %v794_v27 = vadd.f32 %v793_v26, %v659_v22 }
 0x26f   :  { %v804_v28 = vmax.f32 %v794_v27, 0.0 }
 0x270   :  { %v777_v30 = vpop.f32.mrf.mxu2 }
 0x271   :  { %815 = vst [vmem:[#allocation7 + $0x28] sm:$0xff] %v804_v28  ;;  %v778_v31 = vadd.f32 %v777_v30, %v664_v29 }
 0x273   :  { %v805_v32 = vmax.f32 %v778_v31, 0.0 }
 0x274   :  { %v796_v33 = vpop.f32.mrf.mxu3 }
 0x275   :  { %811 = vst [vmem:[#allocation7 + $0x10] sm:$0xff] %v805_v32  ;;  %v797_v34 = vadd.f32 %v796_v33, %v664_v29 }
 0x277   :  { %v806_v35 = vmax.f32 %v797_v34, 0.0 }
 0x278   :  { %v779_v37 = vpop.f32.mrf.mxu2 }
 0x279   :  { %816 = vst [vmem:[#allocation7 + $0x30] sm:$0xff] %v806_v35  ;;  %v780_v38 = vadd.f32 %v779_v37, %v669_v36 }
 0x27b   :  { %v807_v39 = vmax.f32 %v780_v38, 0.0 }
 0x27c   :  { %v798_v40 = vpop.f32.mrf.mxu3 }
 0x27d   :  { %812 = vst [vmem:[#allocation7 + $0x18] sm:$0xff] %v807_v39  ;;  %v799_v41 = vadd.f32 %v798_v40, %v669_v36 }
 0x27f   :  { %v808_v42 = vmax.f32 %v799_v41, 0.0 }
 0x281   :  { %817 = vst [vmem:[#allocation7 + $0x38] sm:$0xff] %v808_v42 }
 0x282   :  { %830 = dma.vmem_to_hbm [thread:$0]  %s823_s18, 1024, %s825_s21, [#allocation6], %s1097_s22, %s1097_s22, %s1098_s23  }
 0x283   :  { %1087 = dma.done.wait [#allocation6], 1024  }
 0x284   :  { %1088 = vsyncadd [#allocation6], 4294966272 }
 0x285   :  { %835 = vsyncpa [#allocation5], 1 }
 0x286   :  { %836 = vsyncpa [#allocation6], 1 }

</bundles_post_ra>
